<compile_context>
chip_gen: v5e
topology: v5e:2x2
jax: 0.10.0
libtpu: 0.0.40
codegen_flags: <defaults>
</compile_context>

<pallas_src>
import jax
import jax.numpy as jnp
from jax.experimental import pallas as pl
from jax.experimental.pallas import tpu as pltpu

_LANES = 128
_BLOCK_BYTES_CAP = 8 * 1024 * 1024     # ~8 MiB per block (per review)
_MIN_PALLAS_BYTES = 1 << 20            # below ~1 MiB a plain fused XLA add wins
_TARGET_GRID_STEPS = 4                 # >= 3-4 steps for full pipeline overlap


def _round_up(x: int, m: int) -> int:
    return -(-x // m) * m


def _sublane_multiple(dtype) -> int:
    # Native packed sublane tile: 8 rows of 32-bit; sub-32-bit dtypes pack
    # along sublanes -> 16 rows for 2-byte, 32 rows for 1-byte dtypes.
    return max(8, 32 // jnp.dtype(dtype).itemsize)


def _vmem_budget_bytes() -> tuple[int, int]:
    """(vmem_limit_bytes, block_bytes_cap) for this chip generation."""
    vmem_capacity = 128 * 1024 * 1024          # assume v5e/v6e if query fails
    try:
        vmem_capacity = int(pltpu.get_tpu_info().vmem_capacity_bytes)
    except Exception:
        pass
    if vmem_capacity <= 64 * 1024 * 1024:      # v7x: 64 MiB VMEM
        # 2 (in+out) x 2 (double buffer) x 8 MiB = 32 MiB + internal scratch.
        return 40 * 1024 * 1024, _BLOCK_BYTES_CAP
    # v5e / v6e: 128 MiB physical VMEM (v5e default scoped is only 16 MiB,
    # so the override is still required).
    return 48 * 1024 * 1024, _BLOCK_BYTES_CAP


def _add_kernel(b_ref, x_ref, o_ref):
    # b_ref: (1,) scalar bias in SMEM; x_ref / o_ref: (TM, 128) VMEM tiles.
    o_ref[...] = x_ref[...] + b_ref[0]


def learnable_add(x: jax.Array, bias: jax.Array, *,
                  min_pallas_bytes: int = _MIN_PALLAS_BYTES,
                  donate: bool = False) -> jax.Array:
    """Elementwise x + scalar bias (LearnableAdd.forward)."""
    if not jnp.issubdtype(x.dtype, jnp.floating):
        # PyTorch promotes int tensor + float 0-dim parameter to float;
        # let XLA handle that (rare) promotion path exactly.
        return x + jnp.asarray(bias)

    out_dtype = x.dtype
    b = jnp.asarray(bias).astype(out_dtype).reshape(1)

    n = x.size
    itemsize = jnp.dtype(out_dtype).itemsize
    nbytes = n * itemsize
    # Fallback: tiny tensors, or flat length not a multiple of 128 lanes
    # (padding would add a full extra HBM pass to a 2-pass kernel).
    if n == 0 or nbytes < min_pallas_bytes or n % _LANES != 0:
        return (x + b[0]).astype(out_dtype)

    rows = n // _LANES
    x2d = x.reshape(rows, _LANES)              # row-major reshape: no copy

    mult = _sublane_multiple(out_dtype)
    vmem_limit, block_bytes_cap = _vmem_budget_bytes()
    cap_rows = max(mult, (block_bytes_cap // (_LANES * itemsize)) // mult * mult)

    if rows <= _TARGET_GRID_STEPS * mult:
        tm = rows                              # single block == full array dims
    else:
        # Largest block <= cap that still leaves >= _TARGET_GRID_STEPS steps,
        # rounded to the dtype's native sublane packing.
        tm = min(cap_rows, _round_up(pl.cdiv(rows, _TARGET_GRID_STEPS), mult))
    grid = (pl.cdiv(rows, tm),)                # ragged last block is masked

    out2d = pl.pallas_call(
        _add_kernel,
        out_shape=jax.ShapeDtypeStruct((rows, _LANES), out_dtype),
        grid_spec=pltpu.PrefetchScalarGridSpec(
            num_scalar_prefetch=0,
            grid=grid,
            in_specs=[
                pl.BlockSpec(memory_space=pltpu.MemorySpace.SMEM),   # (1,) bias
                pl.BlockSpec((tm, _LANES), lambda i: (i, 0)),
            ],
            out_specs=pl.BlockSpec((tm, _LANES), lambda i: (i, 0)),
        ),
        compiler_params=pltpu.CompilerParams(
            dimension_semantics=("parallel",),
            vmem_limit_bytes=vmem_limit,
        ),
        input_output_aliases=({1: 0} if donate else {}),
    )(b, x2d)

    return out2d.reshape(x.shape)


if __name__ == "__main__":
    key = jax.random.PRNGKey(0)
    k1, k2, k3, k4 = jax.random.split(key, 4)

    # Non-zero init so the checks are meaningful (module default is init=0.0).
    bias = jnp.array(0.75, dtype=jnp.float32)

    # Small NCHW-style input consistent with the module: batch=2, C=4, H=W=16.
    x_small = jax.random.normal(k1, (2, 4, 16, 16), dtype=jnp.float32)
    y_small = learnable_add(x_small, bias, min_pallas_bytes=0)  # force Pallas path
    jax.block_until_ready(y_small)
    ref_small = x_small + bias
    assert y_small.shape == x_small.shape and y_small.dtype == x_small.dtype
    assert jnp.array_equal(y_small, ref_small)

    # Medium f32 input: rows=4096 -> tm=1024, 4 grid steps (pipelined).
    x_med = jax.random.normal(k2, (4, 8, 128, 128), dtype=jnp.float32)
    y_med = learnable_add(x_med, bias)
    jax.block_until_ready(y_med)
    assert jnp.array_equal(y_med, x_med + bias)

    # bf16 input exercises the dtype-aware (16-row) sublane rounding.
    x_bf16 = jax.random.normal(k3, (8, 8, 64, 128), dtype=jnp.bfloat16)
    y_bf16 = learnable_add(x_bf16, bias, min_pallas_bytes=0)
    jax.block_until_ready(y_bf16)
    assert jnp.array_equal(y_bf16, x_bf16 + bias.astype(jnp.bfloat16))

    # Ragged grid: rows=240 -> tm=64, 4 blocks, last block masked by Pallas.
    x_rag = jax.random.normal(k4, (3, 5, 16, 128), dtype=jnp.float32)
    y_rag = learnable_add(x_rag, bias, min_pallas_bytes=0)
    jax.block_until_ready(y_rag)
    assert jnp.array_equal(y_rag, x_rag + bias)

    # Default threshold on the tiny input takes the plain-XLA fallback path.
    y_fb = learnable_add(x_small, bias)
    assert jnp.array_equal(y_fb, ref_small)

    print("KERNEL_OK")
</pallas_src>

<mosaic_0001>
module attributes {stable_mosaic.version = 11 : i64} {
  func.func @_add_kernel(%arg0: i32, %arg1: memref<1xf32, #tpu.memory_space<smem>>, %arg2: memref<16x128xf32, #tpu.memory_space<vmem>>, %arg3: memref<16x128xf32, #tpu.memory_space<vmem>>) attributes {dimension_semantics = [#tpu.dimension_semantics<parallel>], iteration_bounds = array<i64: 1>, scalar_prefetch = 0 : i64, scratch_operands = 0 : i64, tpu.core_type = #tpu.core_type<tc>, window_params = [{transform_indices = @transform_0, window_bounds = array<i64: 1>}, {transform_indices = @transform_1, window_bounds = array<i64: 16, 128>}, {transform_indices = @transform_2, window_bounds = array<i64: 16, 128>}]} {
    %c0 = arith.constant 0 : index
    %c0_0 = arith.constant 0 : index
    %0 = vector.load %arg2[%c0, %c0_0] : memref<16x128xf32, #tpu.memory_space<vmem>>, vector<16x128xf32>
    %c0_1 = arith.constant 0 : index
    %1 = memref.load %arg1[%c0_1] : memref<1xf32, #tpu.memory_space<smem>>
    %2 = vector.broadcast %1 : f32 to vector<16x128xf32>
    %3 = arith.addf %0, %2 : vector<16x128xf32>
    %c0_2 = arith.constant 0 : index
    %c0_3 = arith.constant 0 : index
    %4 = vector.load %arg3[%c0_2, %c0_3] : memref<16x128xf32, #tpu.memory_space<vmem>>, vector<16x128xf32>
    tpu.vector_store %arg3[%c0_2, %c0_3], %3 {strides = array<i32>} : memref<16x128xf32, #tpu.memory_space<vmem>>, vector<16x128xf32>,
    return
  }
  func.func @transform_0(%arg0: i32) -> i32 {
    %c0_i32 = arith.constant 0 : i32
    %c0_i32_0 = arith.constant 0 : i32
    return %c0_i32 : i32
  }
  func.func @transform_1(%arg0: i32) -> (i32, i32) {
    %c0_i32 = arith.constant 0 : i32
    %c0_i32_0 = arith.constant 0 : i32
    return %arg0, %c0_i32 : i32, i32
  }
  func.func @transform_2(%arg0: i32) -> (i32, i32) {
    %c0_i32 = arith.constant 0 : i32
    %c0_i32_0 = arith.constant 0 : i32
    return %arg0, %c0_i32 : i32, i32
  }
}

</mosaic_0001>

<bundles_post_ra>
// kernel: tpu_custom_call.1
= control target key start
LH: loop header
LB: loop body
LE: loop exit
PB: predicated region body
PF: predicated region fallthrough
CT: control target
= control target key end

     0   :  { %8 = vsyncpa [#allocation4], 0  ;;  %s140_s0 = inlined_call_operand.<no memory space> [shape: f32[1], index: 0, kind: input, shape index: {}]   ;;  %s141_s1 = inlined_call_operand.hbm [shape: f32[16,128], index: 1, kind: input, shape index: {}]   ;;  %s142_s2 = inlined_call_operand.hbm [shape: f32[16,128], index: 2, kind: output, shape index: {}]  }
   0x1   :  { %9 = vsyncpa [#allocation5], 0  ;;  %s16_s11 = sshll.u32 %s141_s1, 4  ;;  %s112_s12 = smov [#allocation3]   ;;  %s17_s11 = int_to_ptr.hbm [resolvable:$true] %s16_s11 }
   0x2   :  { %s18_s13 = sshll.u32 %s112_s12, 4  ;;  %s113_s14 = smov 128   ;;  %s19_s13 = int_to_ptr.vmem [resolvable:$true] %s18_s13 }
   0x3   :  { %s114_s15 = smov 8  }
   0x4   :  { %24 = dma.hbm_to_vmem [thread:$0]  %s17_s11, 256, %s19_s13, [#allocation4], %s113_s14, %s113_s14, %s114_s15  }
   0x5   :  { %108 = dma.done.wait [#allocation4], 256  }
   0x6   :  { %109 = vsyncadd [#allocation4], 4294967040  ;;  %v32_v0 = vstv %s140_s0  ;;  %s115_s18 = smov [#allocation6]   ;;  %s43_s22 = sshll.u32 %s142_s2, 4  ;;  %v29_v1 = vld [vmem:[#allocation3] sm:$0xff]  ;;  %v30_v2 = vld [vmem:[#allocation3 + $0x8] sm:$0xff]  ;;  %s44_s22 = int_to_ptr.hbm [resolvable:$true] %s43_s22 }
   0x7   :  { %s41_s19 = sshll.u32 %s115_s18, 4  ;;  %v33_v3 = vadd.f32 %v32_v0, %v29_v1  ;;  %v34_v4 = vadd.f32 %v32_v0, %v30_v2  ;;  %s42_s19 = int_to_ptr.vmem [resolvable:$true] %s41_s19 }
   0x9   :  { %35 = vst [vmem:[#allocation6] sm:$0xff] %v33_v3 }
   0xa   :  { %36 = vst [vmem:[#allocation6 + $0x8] sm:$0xff] %v34_v4 }
   0xb   :  { %49 = dma.vmem_to_hbm [thread:$0]  %s42_s19, 256, %s44_s22, [#allocation5], %s113_s14, %s113_s14, %s114_s15  }
   0xc   :  { %110 = dma.done.wait [#allocation5], 256  }
   0xd   :  { %111 = vsyncadd [#allocation5], 4294967040 }
   0xe   :  { %54 = vsyncpa [#allocation4], 1 }
   0xf   :  { %55 = vsyncpa [#allocation5], 1 }

</bundles_post_ra>
